<compile_context>
chip_gen: v6e
topology: v6e:2x2x1
jax: 0.10.0
libtpu: 0.0.40
codegen_flags: <defaults>
</compile_context>

<pallas_src>
import jax
import jax.numpy as jnp
from jax.experimental import pallas as pl
from jax.experimental.pallas import tpu as pltpu


def _round_up(x: int, m: int) -> int:
    return ((x + m - 1) // m) * m


def build_normalized_adjacency(edge_index, num_nodes, rows_p=None, cols_p=None,
                               dtype=jnp.float32):
    """Dense Â = D^-1/2 (A + remaining self loops) D^-1/2, optionally zero-padded.

    Matches PyG gcn_norm semantics more closely than v1:
      * duplicate edges accumulate (scatter-add, 'add' aggregation)
      * self loops are only added for nodes that don't already have one
    """
    rows_p = num_nodes if rows_p is None else rows_p
    cols_p = num_nodes if cols_p is None else cols_p
    src, dst = edge_index[0], edge_index[1]

    A = jnp.zeros((rows_p, cols_p), jnp.float32)
    # message flows src -> dst, i.e. out[dst] += norm * h[src]  => A[dst, src] += 1
    A = A.at[dst, src].add(1.0)
    idx = jnp.arange(num_nodes)
    diag = A[idx, idx]
    A = A.at[idx, idx].add(jnp.where(diag == 0.0, 1.0, 0.0))  # remaining self loops

    deg = jnp.sum(A, axis=1)                                   # zero on padded rows
    dis = jnp.where(deg > 0, jax.lax.rsqrt(deg), 0.0)          # (rows_p,)
    dis_col = jnp.zeros((cols_p,), jnp.float32).at[idx].set(dis[idx])
    return (dis[:, None] * A * dis_col[None, :]).astype(dtype)


def _make_kernel(tk: int, x_resident: bool):
    def gcn_relu_kernel(a_ref, x_ref, w_ref, b_ref, o_ref, acc_ref):
        """Grid = (row tiles i, reduction tiles k over Â columns).

        a_ref : (tm, tk)        bf16  tile of Â
        x_ref : (Np_c, Fp)|(tk,Fp) bf16  resident X or streamed X tile
        w_ref : (Fp, Hp)        bf16  full (padded) weight
        b_ref : (1,  Hp)        f32   full (padded) bias
        o_ref : (tm, Hp)        f32   output row tile (resident across k)
        acc_ref: (tm, Fp)       f32   VMEM accumulator for Â @ X
        """
        k = pl.program_id(1)

        @pl.when(k == 0)
        def _init():
            acc_ref[...] = jnp.zeros_like(acc_ref)

        if x_resident:
            off = pl.multiple_of(k * tk, tk)
            x_tile = x_ref[pl.ds(off, tk), :]
        else:
            x_tile = x_ref[...]

        # Big matmul: Â tile @ X tile on the MXU, bf16 operands, f32 accumulation.
        acc_ref[...] += jnp.dot(a_ref[...], x_tile,
                                preferred_element_type=jnp.float32)

        @pl.when(k == pl.num_programs(1) - 1)
        def _finalize():
            # Small feature transform (bf16 MXU) + bias + ReLU, once per row tile.
            h = jnp.dot(acc_ref[...].astype(jnp.bfloat16), w_ref[...],
                        preferred_element_type=jnp.float32)
            h = h + b_ref[...]
            o_ref[...] = jnp.maximum(h, 0.0).astype(o_ref.dtype)

    return gcn_relu_kernel


def encoder_gcn_forward(x, edge_index, w, b, *, tm=512, tk=1024,
                        vmem_budget=40 << 20):
    """Fused GCNConv + ReLU via a tiled Pallas kernel.

    x:          [N, F] node features
    edge_index: [2, E] int32 (src, dst)
    w:          [F, H] GCN weight
    b:          [1, H] GCN bias
    returns [N, H] float32
    """
    N, F = x.shape
    H = w.shape[1]

    Fp = _round_up(F, 128)     # lane-dense feature dim
    Hp = _round_up(H, 128)     # lane-dense hidden dim

    # ---- tile selection: clamp to problem size, no lcm padding blow-up ----
    tm = min(tm, _round_up(N, 8))
    tk = min(tk, _round_up(N, 128))
    # Keep >= 2 row tiles so the "parallel" i axis can shard across TensorCores.
    if _round_up(N, tm) // tm < 2:
        half = _round_up(max(N // 2, 8), 8)
        if half < tm:
            tm = half

    def _vmem_estimate(tm_, tk_, np_c_, resident_):
        a_bufs = 3 if np_c_ // tk_ >= 3 else 2
        a_b = a_bufs * tm_ * tk_ * 2
        x_b = 2 * (np_c_ * Fp * 2 if resident_ else tk_ * Fp * 2)
        w_b = 2 * Fp * Hp * 2
        bias_b = 2 * 8 * Hp * 4
        o_b = 2 * tm_ * Hp * 4
        acc_b = tm_ * Fp * 4
        return a_b + x_b + w_b + bias_b + o_b + acc_b

    Np_c = _round_up(N, tk)
    x_resident = (Np_c * Fp * 2) <= (vmem_budget // 2)
    while _vmem_estimate(tm, tk, Np_c, x_resident) > vmem_budget and tk > 128:
        tk = max(128, tk // 2)
        Np_c = _round_up(N, tk)
        x_resident = (Np_c * Fp * 2) <= (vmem_budget // 2)
    if _vmem_estimate(tm, tk, Np_c, x_resident) > vmem_budget:
        x_resident = False
    while _vmem_estimate(tm, tk, Np_c, x_resident) > vmem_budget and tm > 8:
        tm = max(8, tm // 2)

    Np_r = _round_up(N, tm)
    Np_c = _round_up(N, tk)
    grid = (Np_r // tm, Np_c // tk)

    # ---- padded operands; Â built normalized + padded + bf16 in one shot ----
    a_p = build_normalized_adjacency(edge_index, N, Np_r, Np_c, dtype=jnp.bfloat16)
    x_p = jnp.zeros((Np_c, Fp), jnp.bfloat16).at[:N, :F].set(x.astype(jnp.bfloat16))
    w_p = jnp.zeros((Fp, Hp), jnp.bfloat16).at[:F, :H].set(w.astype(jnp.bfloat16))
    b_p = jnp.zeros((1, Hp), jnp.float32).at[:, :H].set(b.astype(jnp.float32))

    # Â stream: deepen pipelining only when the reduction axis is deep enough.
    a_spec_kwargs = {}
    if grid[1] >= 3:
        a_spec_kwargs["pipeline_mode"] = pl.Buffered(3)
    a_spec = pl.BlockSpec((tm, tk), lambda i, k: (i, k), **a_spec_kwargs)

    if x_resident:
        # Full-array block, constant index map: fetched from HBM exactly once.
        x_spec = pl.BlockSpec((Np_c, Fp), lambda i, k: (0, 0))
    else:
        x_spec = pl.BlockSpec((tk, Fp), lambda i, k: (k, 0))

    flops = 2 * Np_r * Np_c * Fp + 2 * Np_r * Fp * Hp
    bytes_accessed = (Np_r * Np_c * 2 + Np_c * Fp * 2 + Fp * Hp * 2
                      + Hp * 4 + Np_r * Hp * 4)
    vmem_limit = int(min(max(2 * _vmem_estimate(tm, tk, Np_c, x_resident),
                             32 << 20), 48 << 20))

    out_p = pl.pallas_call(
        _make_kernel(tk, x_resident),
        out_shape=jax.ShapeDtypeStruct((Np_r, Hp), jnp.float32),
        grid_spec=pltpu.PrefetchScalarGridSpec(
            num_scalar_prefetch=0,
            grid=grid,
            in_specs=[
                a_spec,                                        # Â row/col tile
                x_spec,                                        # X (resident or tile)
                pl.BlockSpec((Fp, Hp), lambda i, k: (0, 0)),   # W (whole, bf16)
                pl.BlockSpec((1, Hp), lambda i, k: (0, 0)),    # bias (whole, f32)
            ],
            out_specs=pl.BlockSpec((tm, Hp), lambda i, k: (i, 0)),
            scratch_shapes=[pltpu.VMEM((tm, Fp), jnp.float32)],
        ),
        compiler_params=pltpu.CompilerParams(
            dimension_semantics=("parallel", "arbitrary"),
            vmem_limit_bytes=vmem_limit,
        ),
        cost_estimate=pl.CostEstimate(
            flops=flops, transcendentals=0, bytes_accessed=bytes_accessed),
    )(a_p, x_p, w_p, b_p)

    return out_p[:N, :H]


# TODO(synk): 'gat' and 'sage' Encoder variants not implemented (default is 'gcn').
# TODO(synk): for very sparse graphs (avg degree << N) a CSR / scalar-prefetch
#             gather formulation would beat the dense-Â matmul; dense is kept
#             here to match the GCNConv math exactly.


if __name__ == "__main__":
    key = jax.random.PRNGKey(0)
    N, F, H = 16, 8, 32  # nodes, input_dim, hidden_dim

    k_x, k_w, k_b = jax.random.split(key, 3)
    x = jax.random.normal(k_x, (N, F), jnp.float32)

    # Deterministic parameter init (glorot-ish); synthetic, no checkpoint load.
    w = jax.random.normal(k_w, (F, H), jnp.float32) * jnp.sqrt(2.0 / (F + H))
    b = jax.random.normal(k_b, (1, H), jnp.float32) * 0.01

    # Deterministic ring graph (undirected): edges i <-> (i+1) mod N
    src = jnp.arange(N, dtype=jnp.int32)
    dst = (src + 1) % N
    edge_index = jnp.stack(
        [jnp.concatenate([src, dst]), jnp.concatenate([dst, src])], axis=0
    )

    out = encoder_gcn_forward(x, edge_index, w, b)
    out = jax.block_until_ready(out)

    # Reference check in plain JAX (f32). The kernel runs the matmuls in bf16
    # with f32 accumulation, so use a correspondingly looser tolerance.
    a_hat = build_normalized_adjacency(edge_index, N)  # unpadded f32 Â
    ref = jnp.maximum(a_hat @ (x @ w) + b, 0.0)
    assert out.shape == (N, H)
    assert jnp.allclose(out, ref, atol=2e-2, rtol=2e-2), (
        float(jnp.max(jnp.abs(out - ref)))
    )

    print("KERNEL_OK")
</pallas_src>

<mosaic_0001>
module attributes {stable_mosaic.version = 11 : i64} {
  func.func @gcn_relu_kernel(%arg0: i32, %arg1: i32, %arg2: memref<8x128xbf16, #tpu.memory_space<vmem>>, %arg3: memref<128x128xbf16, #tpu.memory_space<vmem>>, %arg4: memref<128x128xbf16, #tpu.memory_space<vmem>>, %arg5: memref<1x128xf32, #tpu.memory_space<vmem>>, %arg6: memref<8x128xf32, #tpu.memory_space<vmem>>, %arg7: memref<8x128xf32, #tpu.memory_space<vmem>>) attributes {dimension_semantics = [#tpu.dimension_semantics<parallel>, #tpu.dimension_semantics<arbitrary>], iteration_bounds = array<i64: 2, 1>, scalar_prefetch = 0 : i64, scratch_operands = 1 : i64, tpu.core_type = #tpu.core_type<tc>, window_params = [{transform_indices = @transform_0, window_bounds = array<i64: 8, 128>}, {pipeline_mode = #tpu.pipeline_mode<synchronous>, transform_indices = @transform_1, window_bounds = array<i64: 128, 128>}, {pipeline_mode = #tpu.pipeline_mode<synchronous>, transform_indices = @transform_2, window_bounds = array<i64: 128, 128>}, {pipeline_mode = #tpu.pipeline_mode<synchronous>, transform_indices = @transform_3, window_bounds = array<i64: 1, 128>}, {transform_indices = @transform_4, window_bounds = array<i64: 8, 128>}]} {
    %c0_i32 = arith.constant 0 : i32
    %0 = arith.cmpi eq, %arg1, %c0_i32 : i32
    %1 = arith.extui %0 : i1 to i32
    %c0_i32_0 = arith.constant 0 : i32
    %2 = arith.cmpi ne, %1, %c0_i32_0 : i32
    scf.if %2 {
      %cst_9 = arith.constant 0.000000e+00 : f32
      %15 = vector.broadcast %cst_9 : f32 to vector<8x128xf32>
      %c0_10 = arith.constant 0 : index
      %c0_11 = arith.constant 0 : index
      %16 = vector.load %arg7[%c0_10, %c0_11] : memref<8x128xf32, #tpu.memory_space<vmem>>, vector<8x128xf32>
      tpu.vector_store %arg7[%c0_10, %c0_11], %15 {strides = array<i32>} : memref<8x128xf32, #tpu.memory_space<vmem>>, vector<8x128xf32>,
    } else {
    }
    %c128_i32 = arith.constant 128 : i32
    %3 = arith.muli %arg1, %c128_i32 : i32
    %4 = tpu.assume_multiple %3, 128 : i32
    %5 = arith.index_cast %4 : i32 to index
    %c0 = arith.constant 0 : index
    %6 = vector.load %arg3[%5, %c0] : memref<128x128xbf16, #tpu.memory_space<vmem>>, vector<128x128xbf16>
    %c0_1 = arith.constant 0 : index
    %c0_2 = arith.constant 0 : index
    %7 = vector.load %arg7[%c0_1, %c0_2] : memref<8x128xf32, #tpu.memory_space<vmem>>, vector<8x128xf32>
    %c0_3 = arith.constant 0 : index
    %c0_4 = arith.constant 0 : index
    %8 = vector.load %arg2[%c0_3, %c0_4] : memref<8x128xbf16, #tpu.memory_space<vmem>>, vector<8x128xbf16>
    %cst = arith.constant dense<0.000000e+00> : vector<8x128xf32>
    %9 = tpu.matmul %8, %6, %cst {dimension_numbers = #tpu.dot_dimension_numbers<[1], [0], [0], [1], [0, 0, 1, 1], [], []>} : vector<8x128xbf16>, vector<128x128xbf16>, vector<8x128xf32> -> vector<8x128xf32>
    %10 = arith.addf %7, %9 : vector<8x128xf32>
    %c0_5 = arith.constant 0 : index
    %c0_6 = arith.constant 0 : index
    %11 = vector.load %arg7[%c0_5, %c0_6] : memref<8x128xf32, #tpu.memory_space<vmem>>, vector<8x128xf32>
    tpu.vector_store %arg7[%c0_5, %c0_6], %10 {strides = array<i32>} : memref<8x128xf32, #tpu.memory_space<vmem>>, vector<8x128xf32>,
    %c0_i32_7 = arith.constant 0 : i32
    %12 = arith.cmpi eq, %arg1, %c0_i32_7 : i32
    %13 = arith.extui %12 : i1 to i32
    %c0_i32_8 = arith.constant 0 : i32
    %14 = arith.cmpi ne, %13, %c0_i32_8 : i32
    scf.if %14 {
      %c0_9 = arith.constant 0 : index
      %c0_10 = arith.constant 0 : index
      %15 = vector.load %arg7[%c0_9, %c0_10] : memref<8x128xf32, #tpu.memory_space<vmem>>, vector<8x128xf32>
      %16 = arith.truncf %15 : vector<8x128xf32> to vector<8x128xbf16>
      %c0_11 = arith.constant 0 : index
      %c0_12 = arith.constant 0 : index
      %17 = vector.load %arg4[%c0_11, %c0_12] : memref<128x128xbf16, #tpu.memory_space<vmem>>, vector<128x128xbf16>
      %cst_13 = arith.constant dense<0.000000e+00> : vector<8x128xf32>
      %18 = tpu.matmul %16, %17, %cst_13 {dimension_numbers = #tpu.dot_dimension_numbers<[1], [0], [0], [1], [0, 0, 1, 1], [], []>} : vector<8x128xbf16>, vector<128x128xbf16>, vector<8x128xf32> -> vector<8x128xf32>
      %c0_14 = arith.constant 0 : index
      %c0_15 = arith.constant 0 : index
      %19 = vector.load %arg5[%c0_14, %c0_15] : memref<1x128xf32, #tpu.memory_space<vmem>>, vector<1x128xf32>
      %20 = vector.broadcast %19 : vector<1x128xf32> to vector<8x128xf32>
      %21 = arith.addf %18, %20 : vector<8x128xf32>
      %cst_16 = arith.constant 0.000000e+00 : f32
      %22 = vector.broadcast %cst_16 : f32 to vector<8x128xf32>
      %23 = arith.maximumf %21, %22 : vector<8x128xf32>
      %c0_17 = arith.constant 0 : index
      %c0_18 = arith.constant 0 : index
      %24 = vector.load %arg6[%c0_17, %c0_18] : memref<8x128xf32, #tpu.memory_space<vmem>>, vector<8x128xf32>
      tpu.vector_store %arg6[%c0_17, %c0_18], %23 {strides = array<i32>} : memref<8x128xf32, #tpu.memory_space<vmem>>, vector<8x128xf32>,
    } else {
    }
    return
  }
  func.func @transform_0(%arg0: i32, %arg1: i32) -> (i32, i32) {
    %c0_i32 = arith.constant 0 : i32
    return %arg0, %arg1 : i32, i32
  }
  func.func @transform_1(%arg0: i32, %arg1: i32) -> (i32, i32) {
    %c0_i32 = arith.constant 0 : i32
    %c0_i32_0 = arith.constant 0 : i32
    %c0_i32_1 = arith.constant 0 : i32
    return %c0_i32, %c0_i32_0 : i32, i32
  }
  func.func @transform_2(%arg0: i32, %arg1: i32) -> (i32, i32) {
    %c0_i32 = arith.constant 0 : i32
    %c0_i32_0 = arith.constant 0 : i32
    %c0_i32_1 = arith.constant 0 : i32
    return %c0_i32, %c0_i32_0 : i32, i32
  }
  func.func @transform_3(%arg0: i32, %arg1: i32) -> (i32, i32) {
    %c0_i32 = arith.constant 0 : i32
    %c0_i32_0 = arith.constant 0 : i32
    %c0_i32_1 = arith.constant 0 : i32
    return %c0_i32, %c0_i32_0 : i32, i32
  }
  func.func @transform_4(%arg0: i32, %arg1: i32) -> (i32, i32) {
    %c0_i32 = arith.constant 0 : i32
    %c0_i32_0 = arith.constant 0 : i32
    return %arg0, %c0_i32 : i32, i32
  }
}

</mosaic_0001>

<bundles_post_ra>
// kernel: tpu_custom_call.1
= control target key start
LH: loop header
LB: loop body
LE: loop exit
PB: predicated region body
PF: predicated region fallthrough
CT: control target
= control target key end

     0   :  { %9 = vsyncpa [#allocation4], 0  ;;  %s1195_s0 = inlined_call_operand.hbm [shape: bf16[16,128], index: 0, kind: input, shape index: {}]   ;;  %s1196_s1 = inlined_call_operand.hbm [shape: bf16[128,128], index: 1, kind: input, shape index: {}]   ;;  %s1197_s2 = inlined_call_operand.hbm [shape: bf16[128,128], index: 2, kind: input, shape index: {}]   ;;  %s1198_s3 = inlined_call_operand.vmem [shape: f32[1,128], index: 3, kind: input, shape index: {}]   ;;  %s1199_s4 = inlined_call_operand.hbm [shape: f32[16,128], index: 4, kind: output, shape index: {}]  }
   0x1   :  { %11 = vsyncpa [#allocation4 + $0x1], 0 }
   0x2   :  { %12 = vsyncpa [#allocation7], 0 }
   0x3   :  { %13 = vsyncpa [#allocation5], 0 }
   0x4   :  { %15 = vsyncpa [#allocation5 + $0x1], 0  ;;  %s1002_s15 = smov 0   ;;  %s1004_s16 = smov 0  }
   0x5   :  { %s1006_s17 = smov 0   ;;  %s1008_s18 = smov 0  }
   0x6   :  { %s1010_s19 = smov 0   ;;  %s1012_s20 = smov 0  }
   0x7 LB: > { %s608_s21 = sadd.s32 4294967295, %s967_s20   ;;  %s609_s22 = sadd.s32 4294967294, %s967_s20   ;;  %s967_s20 = sphi %s1012_s20, %s21_s20   ;;  %s963_s19 = sphi %s1010_s19, %s1219_s19   ;;  %s959_s18 = sphi %s1008_s18, %s1218_s18   ;;  %s955_s17 = sphi %s1006_s17, %s1217_s17   ;;  %s951_s16 = sphi %s1004_s16, %s1216_s16   ;;  %s947_s15 = sphi %s1002_s15, %s1215_s15  }
   0x8   : > { %p55_p0 = scmp.ne.s32.totalorder %s951_s16, %s947_s15  ;;  %p1036_p1 = scmp.eq.s32.totalorder %s608_s21, 0 }
   0x9   : > { %p1040_p2 = scmp.eq.s32.totalorder %s608_s21, 1  ;;  %p148_p3 = scmp.eq.s32.totalorder %s609_s22, 1 }
   0xa   : > { %s1203_s23 = scalar_select %p1036_p1, 1, 0 }
   0xb   : > { %p1046_p4 = por %p1036_p1, %p55_p0  ;;  %p610_p5 = scmp.ge.s32.totalorder %s967_s20, 1 }
   0xc   : > { %p1051_p6 = por %p148_p3, %p55_p0  ;;  %p155_p7 = scmp.lt.s32.totalorder %s967_s20, 3 }
   0xd   : > { %s1205_s25 = scalar_select %p1046_p4, 1, 0 }
   0xe   : > { %s1206_s26 = scalar_select %p1051_p6, 1, 0 }
   0xf   : > { %p1056_p8 = pnand %p610_p5, %p155_p7  ;;  %s969_s28 = smov [#allocation6]  }
  0x10   : > { %s167_s29 = sshll.u32 %s969_s28, 4  ;;  %s970_s5 = smov [#allocation8]   ;;  %s168_s29 = int_to_ptr.vmem [resolvable:$true] %s167_s29 }
  0x11   : > { %p712_p9 = pneg %p1056_p8  ;;  %s180_s6 = sshll.u32 %s970_s5, 4  ;;  %s181_s6 = int_to_ptr.vmem [resolvable:$true] %s180_s6 }
  0x12   : > { %s814_s7 = scalar_lea.vmem %s168_s29, 1024  ;;  %p822_p5 = scmp.lt.s32.totalorder %s168_s29, %s168_s29 }
  0x13   : > { %p1065_p11 = pnand %p712_p9, %p1036_p1  ;;  %p815_p13 = scmp.ne.s32.totalorder %s168_s29, %s814_s7 }
  0x14   : > { %p823_p7 = scmp.lt.s32.totalorder %s814_s7, %s814_s7 }
  0x15   : > { %p805_p12 = pneg %p1065_p11 }
  0x16   : > { %p824_p10 = por %p823_p7, %p822_p5 }
  0x17   : > { %p817_p0 = pnand %p815_p13, %p805_p12 }
  0x19   : > { %p818_p3 = pneg %p817_p0 }
  0x1b   : > { %p825_p9 = pnand %p824_p10, %p818_p3 }
  0x1d   : > { %828 = shalt.err (!%p825_p9)
}
  0x1e   : > { %s971_s8 = smov 64   ;;  %s972_s9 = smov 4  }
  0x1f   : > { %715 = dma.hbm_to_vmem [thread:$0]  (!%p1065_p11), %s1196_s1, 1024, %s168_s29, [#allocation7], %s971_s8, %s971_s8, %s972_s9  }
  0x20   : > { %s840_s12 = scalar_lea.vmem %s181_s6, 1024  ;;  %p848_p1 = scmp.lt.s32.totalorder %s181_s6, %s181_s6 }
  0x21   : > { %p841_p6 = scmp.ne.s32.totalorder %s181_s6, %s840_s12  ;;  %p849_p4 = scmp.lt.s32.totalorder %s840_s12, %s840_s12 }
  0x23   : > { %p843_p13 = pnand %p841_p6, %p805_p12  ;;  %p850_p5 = por %p849_p4, %p848_p1 }
  0x25   : > { %p844_p0 = pneg %p843_p13 }
  0x27   : > { %p851_p10 = pnand %p850_p5, %p844_p0 }
  0x29   : > { %854 = shalt.err (!%p851_p10)
}
  0x2a   : > { %718 = dma.hbm_to_vmem [thread:$0]  (!%p1065_p11), %s1197_s2, 1024, %s181_s6, [#allocation7], %s971_s8, %s971_s8, %s972_s9  }
  0x2b   : > { %s33_s21 = sadd.s32 1, %s963_s19  ;;  %s42_s22 = sadd.s32 1, %s955_s17 }
  0x2c   : > { %p35_p1 = scmp.ge.s32.totalorder %s33_s21, 2  ;;  %p49_p4 = scmp.ne.s32.totalorder %s955_s17, %s951_s16 }
  0x2d   : > { %p50_p6 = scmp.eq.s32.totalorder %s967_s20, 0  ;;  %p729_p12 = scmp.lt.s32.totalorder %s967_s20, 2 }
  0x2e   : > { %s1221_s21 = smov (%p35_p1, %s33_s21), 0  ;;  %p1097_p7 = por %p1040_p2, %p49_p4 }
  0x2f   : > { %p51_p3 = por %p50_p6, %p49_p4  ;;  %s37_s29 = ssub.s32 %s963_s19, %s1221_s21 }
  0x30   : > { %s197_s30 = sand.u32 1, %s955_s17   ;;  %p40_p9 = scmp.eq.s32.totalorder %s37_s29, 0 }
  0x31   : > { %s614_s5 = sshll.u32 %s197_s30, 2  ;;  %s615_s6 = sshll.u32 %s963_s19, 6 }
  0x32   : > { %s1106_s7 = scalar_select %p40_p9, %s955_s17, %s42_s22  }
  0x33   : > { %s207_s10 = scalar_lea.hbm %s1195_s0, %s615_s6  ;;  %s201_s11 = scalar_lea.vmem [#allocation3], %s614_s5 }
  0x34   : > { %s209_s12 = sshll.u32 %s201_s11, 4  ;;  %p1113_p11 = pnand %p729_p12, %p51_p3  ;;  %s210_s12 = int_to_ptr.vmem [resolvable:$true] %s209_s12 }
  0x35   : > { %s198_s13 = scalar_lea.sflag [#allocation4], %s197_s30  ;;  %s868_s14 = scalar_lea.vmem %s210_s12, 64 }
  0x36   : > { %p857_p2 = pneg %p1113_p11  ;;  %p869_p13 = scmp.ne.s32.totalorder %s210_s12, %s868_s14 }
  0x37   : > { %s973_s22 = smov [#allocation3]  }
  0x38   : > { %p871_p0 = pnand %p869_p13, %p857_p2  ;;  %s873_s29 = sshll.u32 %s973_s22, 4  ;;  %s874_s29 = int_to_ptr.vmem [resolvable:$false] %s873_s29 }
  0x39   : > { %s875_s6 = scalar_lea.vmem %s874_s29, 128  ;;  %p876_p10 = scmp.lt.s32.totalorder %s210_s12, %s874_s29 }
  0x3a   : > { %p872_p5 = pneg %p871_p0  ;;  %p877_p1 = scmp.lt.s32.totalorder %s875_s6, %s868_s14 }
  0x3c   : > { %p878_p4 = por %p877_p1, %p876_p10 }
  0x3e   : > { %p879_p6 = pnand %p878_p4, %p872_p5 }
  0x40   : > { %882 = shalt.err (!%p879_p6)
}
  0x41   : > { %722 = dma.hbm_to_vmem [thread:$0]  (!%p1113_p11), %s207_s10, 64, %s210_s12, %s198_s13  }
  0x42   : > { %218 = sbr.rel (%p1056_p8) target bundleno = 515 (0x203), region = 36  ;;  %s1124_s30 = sand.u32 (!%p1056_p8), 1, %s951_s16  }
  0x43   : > { %s617_s5 = sshll.u32 (!%p1056_p8), %s1124_s30, 2  ;;  %s221_s8 = scalar_lea.sflag (!%p1056_p8), [#allocation4], %s1124_s30 }
  0x44   : > { %s1128_s9 = scalar_lea.vmem (!%p1056_p8), [#allocation3], %s617_s5  ;;  %p1211_p12 = scmp.ne.s32.totalorder (!%p1056_p8), %s1205_s25, 0 }
  0x47   : > { %934 = dma.done.wait (%p1211_p12), %s221_s8, 64  }
  0x48   : > { %936 = vsyncadd (%p1211_p12), %s221_s8, 4294967232  ;;  %p1212_p3 = scmp.ne.s32.totalorder %s1203_s23, 0 }
  0x4a   : > { %938 = dma.done.wait (%p1212_p3), [#allocation7], 2048  }
  0x4b   : > { %940 = vsyncadd (%p1212_p3), [#allocation7], 4294965248  ;;  %v974_v0 = vmov 0.0   ;;  %vm975_vm0 = vmmov 0   ;;  %v787_v1 = vld [vmem:[#allocation6 + $0x38] sm:$0xff]   ;;  %v788_v2 = vld [vmem:[#allocation6 + $0x30] sm:$0xff]  }
  0x4c   : > { %660 = vmatprep.subr.bf16.mxu0 %v974_v0  ;;  %676 = vmatprep.mubr.msk.bf16.mxu0 %vm975_vm0, %v974_v0  ;;  %v789_v3 = vld [vmem:[#allocation6 + $0x28] sm:$0xff]   ;;  %v795_v4 = vld [vmem:[#allocation8 + $0x38] sm:$0xff]   ;;  %v790_v5 = vld [vmem:[#allocation6 + $0x20] sm:$0xff]   ;;  %s620_s23 = sshll.u32 %s1124_s30, 3  ;;  %s639_s10 = sshll.u32 %s959_s18, 7 }
  0x4d   : > { %680 = vmatprep.subr.bf16.mxu1 %v974_v0  ;;  %696 = vmatprep.mubr.msk.bf16.mxu1 %vm975_vm0, %v974_v0  ;;  %v796_v6 = vld [vmem:[#allocation8 + $0x30] sm:$0xff]   ;;  %v791_v7 = vld [vmem:[#allocation6 + $0x18] sm:$0xff]   ;;  %v797_v8 = vld [vmem:[#allocation8 + $0x28] sm:$0xff]   ;;  %s256_s11 = scalar_lea.vmem [#allocation9], %s620_s23  ;;  %s1147_s14 = scalar_lea.hbm %s1199_s4, %s639_s10 }
  0x4e   : > { %661 = vmatpush3.bf16.msra.mxu0 %v787_v1  ;;  %681 = vmatpush3.bf16.msra.mxu1 %v795_v4  ;;  %v792_v9 = vld [vmem:[#allocation6 + $0x10] sm:$0xff]   ;;  %v798_v10 = vld [vmem:[#allocation8 + $0x20] sm:$0xff]   ;;  %v793_v11 = vld [vmem:[#allocation6 + $0x8] sm:$0xff]   ;;  %s508_s12 = sshll.u32 %s256_s11, 4  ;;  %s495_s22 = scalar_lea.sflag [#allocation5], %s1124_s30  ;;  %s1149_s12 = int_to_ptr.vmem [resolvable:$true] %s508_s12 }
  0x4f   : > { %662 = vmatprep.subr.bf16.mxu0 %v974_v0  ;;  %682 = vmatprep.subr.bf16.mxu1 %v974_v0  ;;  %v799_v12 = vld [vmem:[#allocation8 + $0x18] sm:$0xff]   ;;  %v794_v13 = vld [vmem:[#allocation6] sm:$0xff]   ;;  %v800_v14 = vld [vmem:[#allocation8 + $0x10] sm:$0xff]   ;;  %s883_s18 = scalar_lea.vmem %s1149_s12, 128  ;;  %s976_s29 = smov [#allocation9]  }
  0x50   : > { %v285_v15 = vld [vmem:[%s1128_s9] sm:$0xf]  ;;  %v801_v16 = vld [vmem:[#allocation8 + $0x8] sm:$0xff]   ;;  %v802_v17 = vld [vmem:[#allocation8] sm:$0xff]   ;;  %p884_p8 = scmp.ne.s32.totalorder %s1149_s12, %s883_s18  ;;  %s887_s6 = sshll.u32 %s976_s29, 4  ;;  %s888_s6 = int_to_ptr.vmem [resolvable:$false] %s887_s6 }
  0x51   : > { %v629_v23 = vld [vmem:[%s1198_s3] ss:$0 sm:$0xff]  ;;  %s889_s5 = scalar_lea.vmem %s888_s6, 256  ;;  %p890_p2 = scmp.lt.s32.totalorder %s1149_s12, %s888_s6 }
  0x52   : > { %663 = vmatpush3.bf16.msra.mxu0 %v788_v2  ;;  %683 = vmatpush3.bf16.msra.mxu1 %v796_v6  ;;  %p885_p9 = pnand %p884_p8, %p1097_p7  ;;  %p891_p13 = scmp.lt.s32.totalorder %s889_s5, %s883_s18 }
  0x53   : > { %664 = vmatprep.subr.bf16.mxu0 %v974_v0  ;;  %684 = vmatprep.subr.bf16.mxu1 %v974_v0 }
  0x54   : > { %p886_p11 = pneg %p885_p9  ;;  %p892_p0 = por %p891_p13, %p890_p2 }
  0x56   : > { %665 = vmatpush3.bf16.msra.mxu0 %v789_v3  ;;  %685 = vmatpush3.bf16.msra.mxu1 %v797_v8  ;;  %p893_p5 = pnand %p892_p0, %p886_p11 }
  0x57   : > { %666 = vmatprep.subr.bf16.mxu0 %v974_v0  ;;  %686 = vmatprep.subr.bf16.mxu1 %v974_v0 }
  0x5a   : > { %667 = vmatpush3.bf16.msra.mxu0 %v790_v5  ;;  %687 = vmatpush3.bf16.msra.mxu1 %v798_v10 }
  0x5b   : > { %668 = vmatprep.subr.bf16.mxu0 %v974_v0  ;;  %688 = vmatprep.subr.bf16.mxu1 %v974_v0 }
  0x5e   : > { %669 = vmatpush3.bf16.msra.mxu0 %v791_v7  ;;  %689 = vmatpush3.bf16.msra.mxu1 %v799_v12 }
  0x5f   : > { %670 = vmatprep.subr.bf16.mxu0 %v974_v0  ;;  %690 = vmatprep.subr.bf16.mxu1 %v974_v0 }
  0x62   : > { %671 = vmatpush3.bf16.msra.mxu0 %v792_v9  ;;  %691 = vmatpush3.bf16.msra.mxu1 %v800_v14 }
  0x63   : > { %672 = vmatprep.subr.bf16.mxu0 %v974_v0  ;;  %692 = vmatprep.subr.bf16.mxu1 %v974_v0 }
  0x66   : > { %673 = vmatpush3.bf16.msra.mxu0 %v793_v11  ;;  %693 = vmatpush3.bf16.msra.mxu1 %v801_v16 }
  0x67   : > { %674 = vmatprep.subr.bf16.mxu0 %v974_v0  ;;  %694 = vmatprep.subr.bf16.mxu1 %v974_v0 }
  0x6a   : > { %675 = vmatpush3.bf16.msra.mxu0 %v794_v13  ;;  %695 = vmatpush3.bf16.msra.mxu1 %v802_v17 }
  0x6d   : > { %677 = vmatmul.mubr.bf16.vlgmr.msra.gmra.mxu0 %v285_v15 }
 0x12d   : > { %v368_v18 = vpop.f32.mrf.mxu0 }
 0x12e   : > { %v380_v19 = vpack.c.bf16 %v368_v18, %v368_v18 }
 0x12f   : > { %v678_v20 = vpop.f32.mrf.mxu0 }
 0x130   : > { %697 = vmatmul.mubr.bf16.vlgmr.msra.gmra.mxu1 %v380_v19 }
 0x131   : > { %v371_v21 = vpop.f32.mrf.mxu0 }
 0x133   : > { %v679_v22 = vpop.f32.mrf.mxu0 }
 0x1f0   : > { %v486_v24 = vpop.f32.mrf.mxu1 }
 0x1f1   : > { %v487_v25 = vadd.f32 %v629_v23, %v486_v24 }
 0x1f2   : > { %v698_v26 = vpop.f32.mrf.mxu1 }
 0x1f3   : > { %v492_v27 = vmax.f32 %v487_v25, 0.0 }
 0x1f4   : > { %v489_v28 = vpop.f32.mrf.mxu1 }
 0x1f5   : > { %493 = vst [vmem:[%s256_s11] sm:$0xff] %v492_v27 }
 0x1f6   : > { %v699_v29 = vpop.f32.mrf.mxu1 }
 0x1f7   : > { %896 = shalt.err (!%p893_p5)
}
 0x1f8   : > { %s897_s8 = scalar_lea.hbm %s1147_s14, 128  ;;  %s901_s23 = scalar_lea.hbm %s1199_s4, 256 }
 0x1f9   : > { %p898_p10 = scmp.ne.s32.totalorder %s1147_s14, %s897_s8  ;;  %p902_p6 = scmp.lt.s32.totalorder %s1147_s14, %s1199_s4 }
 0x1fa   : > { %p903_p12 = scmp.lt.s32.totalorder %s901_s23, %s897_s8 }
 0x1fb   : > { %p899_p1 = pnand %p898_p10, %p1097_p7 }
 0x1fc   : > { %p904_p3 = por %p903_p12, %p902_p6 }
 0x1fd   : > { %p900_p4 = pneg %p899_p1 }
 0x1ff   : > { %p905_p8 = pnand %p904_p3, %p900_p4 }
 0x201   : > { %908 = shalt.err (!%p905_p8)
}
 0x202   : > { %710 = dma.vmem_to_hbm [thread:$0]  (%p1097_p7), %s1149_s12, 128, %s1147_s14, %s495_s22  }
 0x203 PF: > { %s520_s10 = sand.u32 1, %s947_s15   ;;  %p1213_p9 = scmp.ne.s32.totalorder %s1206_s26, 0 }
 0x204   : > { %p1214_p11 = scmp.ge.s32.totalorder %s967_s20, 2  ;;  %s521_s11 = scalar_lea.sflag [#allocation5], %s520_s10 }
 0x206   : > { %p724_p2 = pnand %p1214_p11, %p1213_p9 }
 0x208   : > { %p725_p13 = pneg %p724_p2 }
 0x20a   : > { %942 = dma.done.wait (%p725_p13), %s521_s11, 128  }
 0x20b   : > { %944 = vsyncadd (%p725_p13), %s521_s11, 4294967168  ;;  %s21_s20 = sadd.s32 1, %s967_s20   ;;  %s1215_s15 = smov %s951_s16 }
 0x20c   : > { %p18_p0 = scmp.ge.s32.totalorder %s21_s20, 4   ;;  %s1216_s16 = smov %s955_s17 }
 0x20d   : > { %s1217_s17 = smov %s1106_s7  ;;  %s1218_s18 = smov %s963_s19 }
 0x20e   : > { %s1219_s19 = smov %s1221_s21  ;;  %20 = sbr.rel (!%p18_p0) target bundleno = 7 (0x7), region = 98 }
 0x213   :  { %526 = vsyncpa [#allocation4], 1 }
 0x214   :  { %528 = vsyncpa [#allocation4 + $0x1], 1 }
 0x215   :  { %529 = vsyncpa [#allocation7], 1 }
 0x216   :  { %530 = vsyncpa [#allocation5], 1 }
 0x217   :  { %532 = vsyncpa [#allocation5 + $0x1], 1 }

</bundles_post_ra>
